<compile_context>
chip_gen: v7x
topology: tpu7x:2x2x1
jax: 0.10.0
libtpu: 0.0.40
codegen_flags: <defaults>
</compile_context>

<pallas_src>
import jax
import jax.numpy as jnp
from jax.experimental import pallas as pl
from jax.experimental.pallas import tpu as pltpu


IN_DIM = 4
HIDDEN = 128
OUT_DIM = 2


def _round_up(x, m):
    return ((x + m - 1) // m) * m


def qnet_kernel(xT_ref, w1_ref, b1_ref, w2_ref, b2_ref, w3_ref, b3_ref, oT_ref):
    xT = xT_ref[...]                                    # (4, TB)   f32

    # fc1 on the MXU: (128,4) @ (4,TB) -> (128,TB).  K=4 padding is free --
    # the MXU slot has huge slack and this avoids the per-k lane broadcasts.
    h1 = jnp.dot(w1_ref[...], xT, preferred_element_type=jnp.float32)
    h1 = jnp.maximum(h1 + b1_ref[...], 0.0)             # (128, TB) f32

    # fc2 on the MXU: bf16 operands, f32 accumulation.
    h2 = jnp.dot(w2_ref[...], h1.astype(jnp.bfloat16),
                 preferred_element_type=jnp.float32)
    h2 = jnp.maximum(h2 + b2_ref[...], 0.0)             # (128, TB) f32

    # fc3 on the MXU: (2,128) @ (128,TB) -> (2,TB), batch stays on the lanes
    # so the store (and HBM writeback) is lane-dense.
    out = jnp.dot(w3_ref[...], h2.astype(jnp.bfloat16),
                  preferred_element_type=jnp.float32)
    oT_ref[...] = (out + b3_ref[...]).astype(oT_ref.dtype)   # (2, TB)


def _choose_tb(B, max_tb):
    # Lane axis -> TB must be a multiple of 128.  For B > 128, split into at
    # least 2 blocks so v7x megacore can shard the batch axis across its TCs.
    if B <= 128:
        return 128
    half = _round_up((B + 1) // 2, 128)
    return min(max_tb, half)


def qnet_forward(x, kparams, *, max_tb=4096):
    """Forward pass of Qnet. x: (B, 4) f32 -> (B, 2) f32."""
    w1, b1, w2, b2, w3, b3 = kparams
    B = x.shape[0]

    TB = _choose_tb(B, max_tb)
    B_pad = _round_up(B, TB)

    # Batch-in-lanes layout: x -> (4, B_pad).  Tiny transpose/pad (B*4 elems).
    xT = x.T
    if B_pad != B:
        xT = jnp.pad(xT, ((0, 0), (0, B_pad - B)))

    grid = (B_pad // TB,)
    resident = lambda i: (0, 0)   # weights/biases: same block every step -> VMEM-resident

    outT = pl.pallas_call(
        qnet_kernel,
        out_shape=jax.ShapeDtypeStruct((OUT_DIM, B_pad), jnp.float32),
        grid=grid,
        in_specs=[
            pl.BlockSpec((IN_DIM, TB), lambda i: (0, i)),     # xT (batch on lanes)
            pl.BlockSpec((HIDDEN, IN_DIM), resident),         # W1 (128,4)   f32
            pl.BlockSpec((HIDDEN, 1), resident),              # b1 (128,1)   f32
            pl.BlockSpec((HIDDEN, HIDDEN), resident),         # W2 (128,128) bf16
            pl.BlockSpec((HIDDEN, 1), resident),              # b2 (128,1)   f32
            pl.BlockSpec((OUT_DIM, HIDDEN), resident),        # W3 (2,128)   bf16
            pl.BlockSpec((OUT_DIM, 1), resident),             # b3 (2,1)     f32
        ],
        out_specs=pl.BlockSpec((OUT_DIM, TB), lambda i: (0, i)),   # lane-dense (2,TB)
        compiler_params=pltpu.CompilerParams(
            dimension_semantics=("parallel",),                # megacore on v7x
            vmem_limit_bytes=32 * 1024 * 1024,                # headroom for TB=4096 temps
        ),
    )(xT, w1, b1, w2, b2, w3, b3)

    # Tiny (2,B) slice + transpose, instead of re-reading a padded (B,128) slab.
    return outT[:, :B].T


def init_params(key):
    # PyTorch nn.Linear layout/init: W (out,in), b (out,), uniform(+-1/sqrt(fan_in)).
    k1, k2, k3, k4, k5, k6 = jax.random.split(key, 6)

    def uni(k, shape, fan_in):
        bound = 1.0 / jnp.sqrt(jnp.float32(fan_in))
        return jax.random.uniform(k, shape, jnp.float32, -bound, bound)

    w1 = uni(k1, (HIDDEN, IN_DIM), IN_DIM)
    b1 = uni(k2, (HIDDEN,), IN_DIM)
    w2 = uni(k3, (HIDDEN, HIDDEN), HIDDEN)
    b2 = uni(k4, (HIDDEN,), HIDDEN)
    w3 = uni(k5, (OUT_DIM, HIDDEN), HIDDEN)
    b3 = uni(k6, (OUT_DIM,), HIDDEN)
    return (w1, b1, w2, b2, w3, b3)


def prepare_qnet_params(params):
    """One-time weight prep (hoisted out of the per-call hot path)."""
    w1, b1, w2, b2, w3, b3 = params
    return (
        w1,                               # (128,4)   f32  (fc1 stays f32, it's tiny)
        b1.reshape(HIDDEN, 1),            # (128,1)   f32
        w2.astype(jnp.bfloat16),          # (128,128) bf16 MXU operand
        b2.reshape(HIDDEN, 1),            # (128,1)   f32
        w3.astype(jnp.bfloat16),          # (2,128)   bf16 MXU operand
        b3.reshape(OUT_DIM, 1),           # (2,1)     f32
    )


def qnet_reference(x, params):
    w1, b1, w2, b2, w3, b3 = params
    h1 = jnp.maximum(x @ w1.T + b1, 0.0)
    h2 = jnp.maximum(h1 @ w2.T + b2, 0.0)
    return h2 @ w3.T + b3


# TODO(synk): sample_action's epsilon-greedy branch uses host-side Python RNG and
# .item(); it is control flow outside the forward pass and is not a kernel.


if __name__ == "__main__":
    key = jax.random.PRNGKey(0)
    pkey, xkey = jax.random.split(key)

    params = init_params(pkey)
    kparams = prepare_qnet_params(params)   # one-time prep, outside the hot path

    B = 6  # small batch of 4-dim observations (CartPole-style), exercises padding
    x = jax.random.normal(xkey, (B, IN_DIM), jnp.float32)

    fwd = jax.jit(qnet_forward)
    out = jax.block_until_ready(fwd(x, kparams))

    ref = qnet_reference(x, params)
    assert out.shape == (B, OUT_DIM)
    # bf16 MXU operands (f32 accumulation) for fc2/fc3 -> loosened tolerance.
    assert jnp.allclose(out, ref, atol=3e-2, rtol=3e-2), (out, ref)

    print("KERNEL_OK")
</pallas_src>

<mosaic_0001>
module attributes {stable_mosaic.version = 11 : i64} {
  func.func @qnet_kernel(%arg0: i32, %arg1: memref<4x128xf32, #tpu.memory_space<vmem>>, %arg2: memref<128x4xf32, #tpu.memory_space<vmem>>, %arg3: memref<128x1xf32, #tpu.memory_space<vmem>>, %arg4: memref<128x128xbf16, #tpu.memory_space<vmem>>, %arg5: memref<128x1xf32, #tpu.memory_space<vmem>>, %arg6: memref<2x128xbf16, #tpu.memory_space<vmem>>, %arg7: memref<2x1xf32, #tpu.memory_space<vmem>>, %arg8: memref<2x128xf32, #tpu.memory_space<vmem>>) attributes {dimension_semantics = [#tpu.dimension_semantics<parallel>], iteration_bounds = array<i64: 1>, scalar_prefetch = 0 : i64, scratch_operands = 0 : i64, tpu.core_type = #tpu.core_type<tc>, window_params = [{transform_indices = @transform_0, window_bounds = array<i64: 4, 128>}, {pipeline_mode = #tpu.pipeline_mode<synchronous>, transform_indices = @transform_1, window_bounds = array<i64: 128, 4>}, {pipeline_mode = #tpu.pipeline_mode<synchronous>, transform_indices = @transform_2, window_bounds = array<i64: 128, 1>}, {pipeline_mode = #tpu.pipeline_mode<synchronous>, transform_indices = @transform_3, window_bounds = array<i64: 128, 128>}, {pipeline_mode = #tpu.pipeline_mode<synchronous>, transform_indices = @transform_4, window_bounds = array<i64: 128, 1>}, {pipeline_mode = #tpu.pipeline_mode<synchronous>, transform_indices = @transform_5, window_bounds = array<i64: 2, 128>}, {pipeline_mode = #tpu.pipeline_mode<synchronous>, transform_indices = @transform_6, window_bounds = array<i64: 2, 1>}, {transform_indices = @transform_7, window_bounds = array<i64: 2, 128>}]} {
    %c0 = arith.constant 0 : index
    %c0_0 = arith.constant 0 : index
    %0 = vector.load %arg1[%c0, %c0_0] : memref<4x128xf32, #tpu.memory_space<vmem>>, vector<4x128xf32>
    %c0_1 = arith.constant 0 : index
    %c0_2 = arith.constant 0 : index
    %1 = vector.load %arg2[%c0_1, %c0_2] : memref<128x4xf32, #tpu.memory_space<vmem>>, vector<128x4xf32>
    %cst = arith.constant dense<0.000000e+00> : vector<128x128xf32>
    %2 = tpu.matmul %1, %0, %cst {dimension_numbers = #tpu.dot_dimension_numbers<[1], [0], [0], [1], [0, 0, 1, 1], [], []>} : vector<128x4xf32>, vector<4x128xf32>, vector<128x128xf32> -> vector<128x128xf32>
    %c0_3 = arith.constant 0 : index
    %c0_4 = arith.constant 0 : index
    %3 = vector.load %arg3[%c0_3, %c0_4] : memref<128x1xf32, #tpu.memory_space<vmem>>, vector<128x1xf32>
    %4 = vector.broadcast %3 : vector<128x1xf32> to vector<128x128xf32>
    %5 = arith.addf %2, %4 : vector<128x128xf32>
    %cst_5 = arith.constant 0.000000e+00 : f32
    %6 = vector.broadcast %cst_5 : f32 to vector<128x128xf32>
    %7 = arith.maximumf %5, %6 : vector<128x128xf32>
    %c0_6 = arith.constant 0 : index
    %c0_7 = arith.constant 0 : index
    %8 = vector.load %arg4[%c0_6, %c0_7] : memref<128x128xbf16, #tpu.memory_space<vmem>>, vector<128x128xbf16>
    %9 = arith.truncf %7 : vector<128x128xf32> to vector<128x128xbf16>
    %cst_8 = arith.constant dense<0.000000e+00> : vector<128x128xf32>
    %10 = tpu.matmul %8, %9, %cst_8 {dimension_numbers = #tpu.dot_dimension_numbers<[1], [0], [0], [1], [0, 0, 1, 1], [], []>} : vector<128x128xbf16>, vector<128x128xbf16>, vector<128x128xf32> -> vector<128x128xf32>
    %c0_9 = arith.constant 0 : index
    %c0_10 = arith.constant 0 : index
    %11 = vector.load %arg5[%c0_9, %c0_10] : memref<128x1xf32, #tpu.memory_space<vmem>>, vector<128x1xf32>
    %12 = vector.broadcast %11 : vector<128x1xf32> to vector<128x128xf32>
    %13 = arith.addf %10, %12 : vector<128x128xf32>
    %cst_11 = arith.constant 0.000000e+00 : f32
    %14 = vector.broadcast %cst_11 : f32 to vector<128x128xf32>
    %15 = arith.maximumf %13, %14 : vector<128x128xf32>
    %c0_12 = arith.constant 0 : index
    %c0_13 = arith.constant 0 : index
    %16 = vector.load %arg6[%c0_12, %c0_13] : memref<2x128xbf16, #tpu.memory_space<vmem>>, vector<2x128xbf16>
    %17 = arith.truncf %15 : vector<128x128xf32> to vector<128x128xbf16>
    %cst_14 = arith.constant dense<0.000000e+00> : vector<2x128xf32>
    %18 = tpu.matmul %16, %17, %cst_14 {dimension_numbers = #tpu.dot_dimension_numbers<[1], [0], [0], [1], [0, 0, 1, 1], [], []>} : vector<2x128xbf16>, vector<128x128xbf16>, vector<2x128xf32> -> vector<2x128xf32>
    %c0_15 = arith.constant 0 : index
    %c0_16 = arith.constant 0 : index
    %19 = vector.load %arg7[%c0_15, %c0_16] : memref<2x1xf32, #tpu.memory_space<vmem>>, vector<2x1xf32>
    %20 = vector.broadcast %19 : vector<2x1xf32> to vector<2x128xf32>
    %21 = arith.addf %18, %20 : vector<2x128xf32>
    %c0_17 = arith.constant 0 : index
    %c0_18 = arith.constant 0 : index
    %22 = vector.load %arg8[%c0_17, %c0_18] : memref<2x128xf32, #tpu.memory_space<vmem>>, vector<2x128xf32>
    tpu.vector_store %arg8[%c0_17, %c0_18], %21 {strides = array<i32>} : memref<2x128xf32, #tpu.memory_space<vmem>>, vector<2x128xf32>,
    return
  }
  func.func @transform_0(%arg0: i32) -> (i32, i32) {
    %c0_i32 = arith.constant 0 : i32
    %c0_i32_0 = arith.constant 0 : i32
    return %c0_i32, %arg0 : i32, i32
  }
  func.func @transform_1(%arg0: i32) -> (i32, i32) {
    %c0_i32 = arith.constant 0 : i32
    %c0_i32_0 = arith.constant 0 : i32
    %c0_i32_1 = arith.constant 0 : i32
    return %c0_i32, %c0_i32_0 : i32, i32
  }
  func.func @transform_2(%arg0: i32) -> (i32, i32) {
    %c0_i32 = arith.constant 0 : i32
    %c0_i32_0 = arith.constant 0 : i32
    %c0_i32_1 = arith.constant 0 : i32
    return %c0_i32, %c0_i32_0 : i32, i32
  }
  func.func @transform_3(%arg0: i32) -> (i32, i32) {
    %c0_i32 = arith.constant 0 : i32
    %c0_i32_0 = arith.constant 0 : i32
    %c0_i32_1 = arith.constant 0 : i32
    return %c0_i32, %c0_i32_0 : i32, i32
  }
  func.func @transform_4(%arg0: i32) -> (i32, i32) {
    %c0_i32 = arith.constant 0 : i32
    %c0_i32_0 = arith.constant 0 : i32
    %c0_i32_1 = arith.constant 0 : i32
    return %c0_i32, %c0_i32_0 : i32, i32
  }
  func.func @transform_5(%arg0: i32) -> (i32, i32) {
    %c0_i32 = arith.constant 0 : i32
    %c0_i32_0 = arith.constant 0 : i32
    %c0_i32_1 = arith.constant 0 : i32
    return %c0_i32, %c0_i32_0 : i32, i32
  }
  func.func @transform_6(%arg0: i32) -> (i32, i32) {
    %c0_i32 = arith.constant 0 : i32
    %c0_i32_0 = arith.constant 0 : i32
    %c0_i32_1 = arith.constant 0 : i32
    return %c0_i32, %c0_i32_0 : i32, i32
  }
  func.func @transform_7(%arg0: i32) -> (i32, i32) {
    %c0_i32 = arith.constant 0 : i32
    %c0_i32_0 = arith.constant 0 : i32
    return %c0_i32, %arg0 : i32, i32
  }
}

</mosaic_0001>

<bundles_post_ra>
// kernel: qnet_forward.1
= control target key start
LH: loop header
LB: loop body
LE: loop exit
PB: predicated region body
PF: predicated region fallthrough
CT: control target
= control target key end

     0   :  { %vm189_vm0 = vcmask 1043456   ;;  %vm140_vm1 = vcmask 31744   ;;  %v853_v3 = vmov 0   ;;  %vm855_vm2 = vmmov 0   ;;  %s1101_s0 = inlined_call_operand.vmem [shape: f32[4,128], index: 0, kind: input, shape index: {}]   ;;  %s1102_s1 = inlined_call_operand.vmem [shape: f32[128,4], index: 1, kind: input, shape index: {}]   ;;  %s1103_s2 = inlined_call_operand.vmem [shape: f32[128,1], index: 2, kind: input, shape index: {}]   ;;  %s1104_s4 = inlined_call_operand.vmem [shape: f32[128,1], index: 4, kind: input, shape index: {}]   ;;  %s1105_s6 = inlined_call_operand.vmem [shape: f32[2,1], index: 6, kind: input, shape index: {}]   ;;  %s1106_s3 = inlined_call_operand.vmem [shape: bf16[128,128], index: 3, kind: input, shape index: {}]   ;;  %s1107_s5 = inlined_call_operand.vmem [shape: bf16[2,128], index: 5, kind: input, shape index: {}]   ;;  %s1108_s7 = inlined_call_operand.vmem [shape: f32[2,128], index: 7, kind: output, shape index: {}]  }
   0x1   :  { %v27_v0 = vld [vmem:[%s1101_s0] sm:$0xf]  ;;  %v29_v2 = vld [vmem:[%s1102_s1 + $0x8] sm:$0xff]  ;;  %843 = vset.pattern.permute.xlu0 %v853_v3  ;;  %844 = vset.pattern.permute.xlu1 %v853_v3  ;;  %v30_v4 = vld [vmem:[%s1102_s1 + $0x10] sm:$0xff] }
   0x2   :  { %v28_v1 = vld [vmem:[%s1102_s1] sm:$0xff]  ;;  %762 = vmatprep.subr.msk.mxu0 %vm189_vm0, %v27_v0  ;;  %v31_v6 = vld [vmem:[%s1102_s1 + $0x18] sm:$0xff]  ;;  %v45_v8 = vld [vmem:[%s1103_s2 + $0x8] sm:$0xff] }
   0x3   :  { %764 = vmatprep.mubr.msk.f32.mxu0 %vm140_vm1, %v28_v1  ;;  %763 = vmatpush3.msk.msra.mxu0 %vm189_vm0, %v27_v0  ;;  %v44_v5 = vld [vmem:[%s1103_s2] sm:$0xff]  ;;  %v46_v9 = vld [vmem:[%s1103_s2 + $0x10] sm:$0xff]  ;;  %v47_v10 = vld [vmem:[%s1103_s2 + $0x18] sm:$0xff] }
   0x4   :  { %765 = vmatmul.mubr.msk.f32.vlgmr.msra.gmra.mrb[0].mxu0 %vm140_vm1, %v29_v2  ;;  %62 = vperm.xlu0 %843, %v44_v5   ;;  %v32_v7 = vld [vmem:[%s1102_s1 + $0x20] sm:$0xff]  ;;  %v33_v11 = vld [vmem:[%s1102_s1 + $0x28] sm:$0xff]  ;;  %v34_v12 = vld [vmem:[%s1102_s1 + $0x30] sm:$0xff] }
   0x5   :  { %767 = vmatprep.mubr.msk.f32.mxu0 %vm140_vm1, %v30_v4  ;;  %72 = vperm.xlu1 %844, %v46_v9   ;;  %v48_v13 = vld [vmem:[%s1103_s2 + $0x20] sm:$0xff]  ;;  %v49_v14 = vld [vmem:[%s1103_s2 + $0x28] sm:$0xff]  ;;  %v35_v15 = vld [vmem:[%s1102_s1 + $0x38] sm:$0xff] }
   0x6   :  { %v36_v16 = vld [vmem:[%s1102_s1 + $0x40] sm:$0xff]  ;;  %v50_v17 = vld [vmem:[%s1103_s2 + $0x30] sm:$0xff]  ;;  %v51_v18 = vld [vmem:[%s1103_s2 + $0x38] sm:$0xff] }
   0x7   :  { %v37_v19 = vld [vmem:[%s1102_s1 + $0x48] sm:$0xff]  ;;  %v38_v20 = vld [vmem:[%s1102_s1 + $0x50] sm:$0xff]  ;;  %v52_v21 = vld [vmem:[%s1103_s2 + $0x40] sm:$0xff] }
   0x8   :  { %768 = vmatmul.mubr.msk.f32.gmra.mrb[2].mxu0 %vm140_vm1, %v31_v6  ;;  %67 = vperm.xlu0 %843, %v45_v8   ;;  %v53_v22 = vld [vmem:[%s1103_s2 + $0x48] sm:$0xff]  ;;  %v39_v23 = vld [vmem:[%s1102_s1 + $0x58] sm:$0xff]  ;;  %v40_v24 = vld [vmem:[%s1102_s1 + $0x60] sm:$0xff] }
   0x9   :  { %770 = vmatprep.mubr.msk.f32.mxu0 %vm140_vm1, %v32_v7  ;;  %77 = vperm.xlu1 %844, %v47_v10   ;;  %v54_v25 = vld [vmem:[%s1103_s2 + $0x50] sm:$0xff]  ;;  %v55_v26 = vld [vmem:[%s1103_s2 + $0x58] sm:$0xff]  ;;  %v41_v27 = vld [vmem:[%s1102_s1 + $0x68] sm:$0xff] }
   0xa   :  { %v42_v28 = vld [vmem:[%s1102_s1 + $0x70] sm:$0xff]  ;;  %v56_v29 = vld [vmem:[%s1103_s2 + $0x60] sm:$0xff]  ;;  %v57_v30 = vld [vmem:[%s1103_s2 + $0x68] sm:$0xff] }
   0xb   :  { %v43_v31 = vld [vmem:[%s1102_s1 + $0x78] sm:$0xff]  ;;  %v58_v32 = vld [vmem:[%s1103_s2 + $0x70] sm:$0xff]  ;;  %v378_v34 = vld [vmem:[%s1104_s4] sm:$0xff] }
   0xc   :  { %771 = vmatmul.mubr.msk.f32.gmra.mrb[4].mxu0 %vm140_vm1, %v33_v11  ;;  %82 = vperm.xlu0 %843, %v48_v13   ;;  %v59_v33 = vld [vmem:[%s1103_s2 + $0x78] sm:$0xff]  ;;  %v379_v35 = vld [vmem:[%s1104_s4 + $0x8] sm:$0xff]  ;;  %v380_v36 = vld [vmem:[%s1104_s4 + $0x10] sm:$0xff] }
   0xd   :  { %773 = vmatprep.mubr.msk.f32.mxu0 %vm140_vm1, %v34_v12  ;;  %87 = vperm.xlu1 %844, %v49_v14   ;;  %v381_v37 = vld [vmem:[%s1104_s4 + $0x18] sm:$0xff]  ;;  %v382_v38 = vld [vmem:[%s1104_s4 + $0x20] sm:$0xff]  ;;  %v383_v39 = vld [vmem:[%s1104_s4 + $0x28] sm:$0xff] }
   0xe   :  { %v384_v40 = vld [vmem:[%s1104_s4 + $0x30] sm:$0xff]  ;;  %v385_v41 = vld [vmem:[%s1104_s4 + $0x38] sm:$0xff]  ;;  %v386_v42 = vld [vmem:[%s1104_s4 + $0x40] sm:$0xff] }
   0xf   :  { %v387_v43 = vld [vmem:[%s1104_s4 + $0x48] sm:$0xff]  ;;  %v388_v44 = vld [vmem:[%s1104_s4 + $0x50] sm:$0xff]  ;;  %v389_v45 = vld [vmem:[%s1104_s4 + $0x58] sm:$0xff] }
  0x10   :  { %774 = vmatmul.mubr.msk.f32.gmra.mrb[6].mxu0 %vm140_vm1, %v35_v15  ;;  %92 = vperm.xlu0 %843, %v50_v17   ;;  %v390_v46 = vld [vmem:[%s1104_s4 + $0x60] sm:$0xff]  ;;  %v391_v47 = vld [vmem:[%s1104_s4 + $0x68] sm:$0xff]  ;;  %v392_v48 = vld [vmem:[%s1104_s4 + $0x70] sm:$0xff] }
  0x11   :  { %776 = vmatprep.mubr.msk.f32.mxu0 %vm140_vm1, %v36_v16  ;;  %97 = vperm.xlu1 %844, %v51_v18   ;;  %v393_v49 = vld [vmem:[%s1104_s4 + $0x78] sm:$0xff]  ;;  %v644_v50 = vld [vmem:[%s1105_s6] sm:$0x3] }
  0x12   :  { %v845_v51 = vld [vmem:[%s1106_s3] sm:$0xff]  }
  0x13   :  { %804 = vmatprep.mubr.bf16.mxu1 %v845_v51 }
  0x14   :  { %777 = vmatmul.mubr.msk.f32.gmra.mrb[8].mxu0 %vm140_vm1, %v37_v19  ;;  %102 = vperm.xlu0 %843, %v52_v21  }
  0x15   :  { %779 = vmatprep.mubr.msk.f32.mxu0 %vm140_vm1, %v38_v20  ;;  %107 = vperm.xlu1 %844, %v53_v22  }
  0x18   :  { %780 = vmatmul.mubr.msk.f32.gmra.mrb[10].mxu0 %vm140_vm1, %v39_v23  ;;  %112 = vperm.xlu0 %843, %v54_v25  }
  0x19   :  { %782 = vmatprep.mubr.msk.f32.mxu0 %vm140_vm1, %v40_v24  ;;  %117 = vperm.xlu1 %844, %v55_v26  }
  0x1c   :  { %783 = vmatmul.mubr.msk.f32.gmra.mrb[12].mxu0 %vm140_vm1, %v41_v27  ;;  %122 = vperm.xlu0 %843, %v56_v29  }
  0x1d   :  { %785 = vmatprep.mubr.msk.f32.mxu0 %vm140_vm1, %v42_v28  ;;  %127 = vperm.xlu1 %844, %v57_v30  }
  0x20   :  { %786 = vmatmul.mubr.msk.f32.gmra.mrb[14].mxu0 %vm140_vm1, %v43_v31  ;;  %132 = vperm.xlu0 %843, %v58_v32  }
  0x21   :  { %137 = vperm.xlu1 %844, %v59_v33  }
  0x24   :  { %396 = vperm.xlu0 %843, %v378_v34  }
  0x25   :  { %401 = vperm.xlu1 %844, %v379_v35  }
  0x28   :  { %406 = vperm.xlu0 %843, %v380_v36  }
  0x29   :  { %411 = vperm.xlu1 %844, %v381_v37  }
  0x2c   :  { %416 = vperm.xlu0 %843, %v382_v38  }
  0x2d   :  { %421 = vperm.xlu1 %844, %v383_v39  }
  0x30   :  { %426 = vperm.xlu0 %843, %v384_v40  }
  0x31   :  { %431 = vperm.xlu1 %844, %v385_v41  }
  0x34   :  { %436 = vperm.xlu0 %843, %v386_v42  }
  0x35   :  { %441 = vperm.xlu1 %844, %v387_v43  }
  0x38   :  { %446 = vperm.xlu0 %843, %v388_v44  }
  0x39   :  { %451 = vperm.xlu1 %844, %v389_v45  }
  0x3c   :  { %456 = vperm.xlu0 %843, %v390_v46  }
  0x3d   :  { %461 = vperm.xlu1 %844, %v391_v47  }
  0x40   :  { %466 = vperm.xlu0 %843, %v392_v48  }
  0x41   :  { %471 = vperm.xlu1 %844, %v393_v49  }
  0x44   :  { %647 = vperm.xlu0 %843, %v644_v50  }
  0x83   :  { %v63_v53 = vpop.permute.xlu0 %62 }
  0x84   :  { %v73_v52 = vpop.permute.xlu1 %72 }
  0x87   :  { %v68_v55 = vpop.permute.xlu0 %67 }
  0x88   :  { %v78_v54 = vpop.permute.xlu1 %77 }
  0x8b   :  { %v83_v57 = vpop.permute.xlu0 %82 }
  0x8c   :  { %v88_v56 = vpop.permute.xlu1 %87 }
  0x8f   :  { %v93_v2 = vpop.permute.xlu0 %92 }
  0x90   :  { %v98_v63 = vpop.permute.xlu1 %97 }
  0x93   :  { %v103_v15 = vpop.permute.xlu0 %102 }
  0x94   :  { %v108_v12 = vpop.permute.xlu1 %107 }
  0x97   :  { %v113_v27 = vpop.permute.xlu0 %112 }
  0x98   :  { %v118_v24 = vpop.permute.xlu1 %117 }
  0x9b   :  { %v123_v40 = vpop.permute.xlu0 %122 }
  0x9c   :  { %v128_v37 = vpop.permute.xlu1 %127 }
  0xa0   :  { %v138_v49 = vpop.permute.xlu1 %137 }
  0xd7   :  { %v766_v58 = vpop.f32.mrb[0].mxu0 }
  0xd8   :  { %v265_v59 = vadd.f32 %v766_v58, %v68_v55  ;;  %v259_v60 = vpop.f32.mrb[1].mxu0 }
  0xd9   :  { %v260_v61 = vadd.f32 %v259_v60, %v63_v53  ;;  %v846_v60 = vld [vmem:[%s1106_s3 + $0x8] sm:$0xff]  }
  0xda   :  { %v339_v62 = vmax.f32 %v265_v59, 0.0 }
  0xdb   :  { %v338_v0 = vmax.f32 %v260_v61, 0.0  ;;  %v769_v1 = vpop.f32.mrb[2].mxu0  ;;  %v847_v61 = vld [vmem:[%s1106_s3 + $0x10] sm:$0xff]  }
  0xdc   :  { %v275_v3 = vadd.f32 %v769_v1, %v78_v54  ;;  %v269_v4 = vpop.f32.mrb[3].mxu0  ;;  %v851_v1 = vld [vmem:[%s1106_s3 + $0x30] sm:$0xff]  }
  0xdd   :  { %v270_v5 = vadd.f32 %v269_v4, %v73_v52  ;;  %v370_v6 = vpack.c.bf16 %v339_v62, %v338_v0  ;;  %v133_v52 = vpop.permute.xlu0 %132  ;;  %v848_v62 = vld [vmem:[%s1106_s3 + $0x18] sm:$0xff]   ;;  %v850_v0 = vld [vmem:[%s1106_s3 + $0x28] sm:$0xff]  }
  0xde   :  { %v341_v7 = vmax.f32 %v275_v3, 0.0  ;;  %v854_v3 = vmov 0.0  }
  0xdf   :  { %v340_v8 = vmax.f32 %v270_v5, 0.0  ;;  %v772_v9 = vpop.f32.mrb[4].mxu0  ;;  %788 = vmatprep.subr.bf16.mxu1 %v370_v6  ;;  %820 = vmatprep.subr.bf16.mxu0 %v854_v3  ;;  %v402_v5 = vpop.permute.xlu1 %401 }
  0xe0   :  { %v285_v10 = vadd.f32 %v772_v9, %v88_v56  ;;  %v279_v11 = vpop.f32.mrb[5].mxu0  ;;  %789 = vmatpush3.bf16.msra.mxu1 %v370_v6  ;;  %836 = vmatprep.mubr.msk.bf16.mxu0 %vm855_vm2, %v854_v3 }
  0xe1   :  { %v371_v13 = vpack.c.bf16 %v341_v7, %v340_v8  ;;  %v280_v14 = vadd.f32 %v279_v11, %v83_v57  ;;  %v397_v4 = vpop.permute.xlu0 %396 }
  0xe2   :  { %v343_v16 = vmax.f32 %v285_v10, 0.0 }
  0xe3   :  { %v342_v17 = vmax.f32 %v280_v14, 0.0  ;;  %v775_v18 = vpop.f32.mrb[6].mxu0  ;;  %790 = vmatprep.subr.bf16.mxu1 %v371_v13  ;;  %v412_v7 = vpop.permute.xlu1 %411 }
  0xe4   :  { %v295_v19 = vadd.f32 %v775_v18, %v98_v63  ;;  %v289_v20 = vpop.f32.mrb[7].mxu0  ;;  %791 = vmatpush3.bf16.msra.mxu1 %v371_v13  ;;  %v849_v63 = vld [vmem:[%s1106_s3 + $0x20] sm:$0xff]  }
  0xe5   :  { %v372_v21 = vpack.c.bf16 %v343_v16, %v342_v17  ;;  %v290_v22 = vadd.f32 %v289_v20, %v93_v2  ;;  %v852_v2 = vld [vmem:[%s1106_s3 + $0x38] sm:$0xff]   ;;  %v407_v6 = vpop.permute.xlu0 %406 }
  0xe6   :  { %v345_v23 = vmax.f32 %v295_v19, 0.0 }
  0xe7   :  { %v344_v25 = vmax.f32 %v290_v22, 0.0  ;;  %v778_v26 = vpop.f32.mrb[8].mxu0  ;;  %792 = vmatprep.subr.bf16.mxu1 %v372_v21  ;;  %v422_v9 = vpop.permute.xlu1 %421 }
  0xe8   :  { %v305_v28 = vadd.f32 %v778_v26, %v108_v12  ;;  %v299_v29 = vpop.f32.mrb[9].mxu0  ;;  %793 = vmatpush3.bf16.msra.mxu1 %v372_v21 }
  0xe9   :  { %v373_v30 = vpack.c.bf16 %v345_v23, %v344_v25  ;;  %v300_v31 = vadd.f32 %v299_v29, %v103_v15  ;;  %v417_v8 = vpop.permute.xlu0 %416 }
  0xea   :  { %v347_v32 = vmax.f32 %v305_v28, 0.0 }
  0xeb   :  { %v346_v33 = vmax.f32 %v300_v31, 0.0  ;;  %v781_v34 = vpop.f32.mrb[10].mxu0  ;;  %794 = vmatprep.subr.bf16.mxu1 %v373_v30  ;;  %v432_v14 = vpop.permute.xlu1 %431 }
  0xec   :  { %v315_v35 = vadd.f32 %v781_v34, %v118_v24  ;;  %v309_v36 = vpop.f32.mrb[11].mxu0  ;;  %795 = vmatpush3.bf16.msra.mxu1 %v373_v30 }
  0xed   :  { %v374_v38 = vpack.c.bf16 %v347_v32, %v346_v33  ;;  %v310_v39 = vadd.f32 %v309_v36, %v113_v27  ;;  %v427_v10 = vpop.permute.xlu0 %426 }
  0xee   :  { %v349_v41 = vmax.f32 %v315_v35, 0.0 }
  0xef   :  { %v348_v42 = vmax.f32 %v310_v39, 0.0  ;;  %v784_v43 = vpop.f32.mrb[12].mxu0  ;;  %796 = vmatprep.subr.bf16.mxu1 %v374_v38  ;;  %v442_v26 = vpop.permute.xlu1 %441 }
  0xf0   :  { %v325_v44 = vadd.f32 %v784_v43, %v128_v37  ;;  %v319_v45 = vpop.f32.mrb[13].mxu0  ;;  %797 = vmatpush3.bf16.msra.mxu1 %v374_v38 }
  0xf1   :  { %v375_v46 = vpack.c.bf16 %v349_v41, %v348_v42  ;;  %v320_v47 = vadd.f32 %v319_v45, %v123_v40  ;;  %v437_v22 = vpop.permute.xlu0 %436 }
  0xf2   :  { %v351_v48 = vmax.f32 %v325_v44, 0.0 }
  0xf3   :  { %v350_v50 = vmax.f32 %v320_v47, 0.0  ;;  %v787_v51 = vpop.f32.mrb[14].mxu0  ;;  %798 = vmatprep.subr.bf16.mxu1 %v375_v46  ;;  %v452_v39 = vpop.permute.xlu1 %451 }
  0xf4   :  { %v335_v53 = vadd.f32 %v787_v51, %v138_v49  ;;  %v329_v54 = vpop.f32.mrb[15].mxu0  ;;  %799 = vmatpush3.bf16.msra.mxu1 %v375_v46 }
  0xf5   :  { %v376_v55 = vpack.c.bf16 %v351_v48, %v350_v50  ;;  %v330_v56 = vadd.f32 %v329_v54, %v133_v52  ;;  %v447_v35 = vpop.permute.xlu0 %446 }
  0xf6   :  { %v353_v57 = vmax.f32 %v335_v53, 0.0 }
  0xf7   :  { %v352_v58 = vmax.f32 %v330_v56, 0.0  ;;  %800 = vmatprep.subr.bf16.mxu1 %v376_v55  ;;  %v462_v52 = vpop.permute.xlu1 %461 }
  0xf8   :  { %801 = vmatpush3.bf16.msra.mxu1 %v376_v55 }
  0xf9   :  { %v377_v59 = vpack.c.bf16 %v353_v57, %v352_v58  ;;  %v457_v47 = vpop.permute.xlu0 %456 }
  0xfb   :  { %802 = vmatprep.subr.bf16.mxu1 %v377_v59 }
  0xfc   :  { %803 = vmatpush3.bf16.msra.mxu1 %v377_v59 }
  0xfd   :  { %v467_v59 = vpop.permute.xlu0 %466 }
  0xff   :  { %805 = vmatmul.mubr.bf16.vlgmr.msra.gmra.mrb[0].mxu1 %v846_v60 }
 0x100   :  { %808 = vmatprep.mubr.bf16.mxu1 %v847_v61 }
 0x107   :  { %809 = vmatmul.mubr.bf16.gmra.mrb[4].mxu1 %v848_v62 }
 0x108   :  { %812 = vmatprep.mubr.bf16.mxu1 %v849_v63 }
 0x10f   :  { %813 = vmatmul.mubr.bf16.gmra.mrb[8].mxu1 %v850_v0  ;;  %v472_v0 = vpop.permute.xlu1 %471 }
 0x110   :  { %816 = vmatprep.mubr.bf16.mxu1 %v851_v1 }
 0x117   :  { %817 = vmatmul.mubr.bf16.gmra.mrb[12].mxu1 %v852_v2 }
 0x1d2   :  { %v806_v11 = vpop.f32.mrb[0].mxu1 }
 0x1d3   :  { %v565_v12 = vadd.f32 %v806_v11, %v407_v6  ;;  %v556_v13 = vpop.f32.mrb[1].mxu1 }
 0x1d4   :  { %v557_v15 = vadd.f32 %v556_v13, %v397_v4  ;;  %v807_v16 = vpop.f32.mrb[2].mxu1  ;;  %v635_v13 = vld [vmem:[%s1107_s5] sm:$0x1] }
 0x1d5   :  { %v568_v17 = vadd.f32 %v807_v16, %v412_v7  ;;  %v559_v18 = vpop.f32.mrb[3].mxu1  ;;  %v621_v20 = vmax.f32 %v565_v12, 0.0 }
 0x1d6   :  { %v560_v19 = vadd.f32 %v559_v18, %v402_v5  ;;  %v619_v23 = vmax.f32 %v557_v15, 0.0 }
 0x1d7   :  { %v622_v21 = vmax.f32 %v568_v17, 0.0 }
 0x1d8   :  { %v620_v24 = vmax.f32 %v560_v19, 0.0 }
 0x1d9   :  { %v637_v25 = vpack.c.bf16 %v622_v21, %v621_v20 }
 0x1da   :  { %v636_v27 = vpack.c.bf16 %v620_v24, %v619_v23  ;;  %v810_v28 = vpop.f32.mrb[4].mxu1 }
 0x1db   :  { %v581_v29 = vadd.f32 %v810_v28, %v427_v10  ;;  %v572_v30 = vpop.f32.mrb[5].mxu1 }
 0x1dc   :  { %v573_v31 = vadd.f32 %v572_v30, %v417_v8  ;;  %v811_v32 = vpop.f32.mrb[6].mxu1  ;;  %821 = vmatpush3.bf16.msra.mxu0 %v636_v27 }
 0x1dd   :  { %v584_v33 = vadd.f32 %v811_v32, %v432_v14  ;;  %v575_v34 = vpop.f32.mrb[7].mxu1  ;;  %822 = vmatprep.subr.bf16.mxu0 %v854_v3  ;;  %v625_v37 = vmax.f32 %v581_v29, 0.0  ;;  %v648_v14 = vpop.permute.xlu0 %647 }
 0x1de   :  { %v576_v36 = vadd.f32 %v575_v34, %v422_v9  ;;  %v623_v40 = vmax.f32 %v573_v31, 0.0 }
 0x1df   :  { %v626_v38 = vmax.f32 %v584_v33, 0.0 }
 0x1e0   :  { %v624_v41 = vmax.f32 %v576_v36, 0.0  ;;  %823 = vmatpush3.bf16.msra.mxu0 %v637_v25 }
 0x1e1   :  { %v639_v42 = vpack.c.bf16 %v626_v38, %v625_v37  ;;  %824 = vmatprep.subr.bf16.mxu0 %v854_v3 }
 0x1e2   :  { %v638_v43 = vpack.c.bf16 %v624_v41, %v623_v40  ;;  %v814_v44 = vpop.f32.mrb[8].mxu1 }
 0x1e3   :  { %v597_v45 = vadd.f32 %v814_v44, %v447_v35  ;;  %v588_v46 = vpop.f32.mrb[9].mxu1 }
 0x1e4   :  { %v589_v48 = vadd.f32 %v588_v46, %v437_v22  ;;  %v815_v49 = vpop.f32.mrb[10].mxu1  ;;  %825 = vmatpush3.bf16.msra.mxu0 %v638_v43 }
 0x1e5   :  { %v600_v50 = vadd.f32 %v815_v49, %v452_v39  ;;  %v591_v51 = vpop.f32.mrb[11].mxu1  ;;  %826 = vmatprep.subr.bf16.mxu0 %v854_v3  ;;  %v629_v54 = vmax.f32 %v597_v45, 0.0 }
 0x1e6   :  { %v592_v53 = vadd.f32 %v591_v51, %v442_v26  ;;  %v627_v56 = vmax.f32 %v589_v48, 0.0 }
 0x1e7   :  { %v630_v55 = vmax.f32 %v600_v50, 0.0 }
 0x1e8   :  { %v628_v57 = vmax.f32 %v592_v53, 0.0  ;;  %827 = vmatpush3.bf16.msra.mxu0 %v639_v42 }
 0x1e9   :  { %v641_v58 = vpack.c.bf16 %v630_v55, %v629_v54  ;;  %828 = vmatprep.subr.bf16.mxu0 %v854_v3 }
 0x1ea   :  { %v640_v60 = vpack.c.bf16 %v628_v57, %v627_v56  ;;  %v818_v61 = vpop.f32.mrb[12].mxu1 }
 0x1eb   :  { %v613_v62 = vadd.f32 %v818_v61, %v467_v59  ;;  %v604_v63 = vpop.f32.mrb[13].mxu1 }
 0x1ec   :  { %v605_v1 = vadd.f32 %v604_v63, %v457_v47  ;;  %v819_v2 = vpop.f32.mrb[14].mxu1  ;;  %829 = vmatpush3.bf16.msra.mxu0 %v640_v60 }
 0x1ed   :  { %v616_v4 = vadd.f32 %v819_v2, %v472_v0  ;;  %v607_v5 = vpop.f32.mrb[15].mxu1  ;;  %830 = vmatprep.subr.bf16.mxu0 %v854_v3  ;;  %v633_v7 = vmax.f32 %v613_v62, 0.0 }
 0x1ee   :  { %v608_v6 = vadd.f32 %v607_v5, %v462_v52  ;;  %v631_v9 = vmax.f32 %v605_v1, 0.0 }
 0x1ef   :  { %v634_v8 = vmax.f32 %v616_v4, 0.0 }
 0x1f0   :  { %v632_v10 = vmax.f32 %v608_v6, 0.0  ;;  %831 = vmatpush3.bf16.msra.mxu0 %v641_v58 }
 0x1f1   :  { %v643_v11 = vpack.c.bf16 %v634_v8, %v633_v7  ;;  %832 = vmatprep.subr.bf16.mxu0 %v854_v3 }
 0x1f2   :  { %v642_v12 = vpack.c.bf16 %v632_v10, %v631_v9 }
 0x1f4   :  { %833 = vmatpush3.bf16.msra.mxu0 %v642_v12 }
 0x1f5   :  { %834 = vmatprep.subr.bf16.mxu0 %v854_v3 }
 0x1f8   :  { %835 = vmatpush3.bf16.msra.mxu0 %v643_v11 }
 0x1fb   :  { %837 = vmatmul.mubr.bf16.vlgmr.msra.gmra.mrb[16].mxu0 %v635_v13 }
 0x2ce   :  { %v684_v15 = vpop.f32.mrb[16].mxu0 }
 0x2cf   :  { %v685_v16 = vadd.f32 %v684_v15, %v648_v14  ;;  %v838_v17 = vpop.f32.mrb[17].mxu0 }
 0x2d0   :  { %v687_v18 = vpop.f32.mrb[18].mxu0 }
 0x2d1   :  { %690 = vst [vmem:[%s1108_s7] sm:$0x3] %v685_v16  ;;  %v839_v19 = vpop.f32.mrb[19].mxu0 }

</bundles_post_ra>
